<compile_context>
chip_gen: v6e
topology: v6e:2x2x1
jax: 0.10.0
libtpu: 0.0.40
codegen_flags: <defaults>
</compile_context>

<pallas_src>
import functools

import jax
import jax.numpy as jnp
from jax.experimental import pallas as pl
from jax.experimental.pallas import tpu as pltpu

_LANE = 128


# ----------------------------------------------------------------------------
# Fused Pallas kernel: whole PreModel forward for ONE contrastive view.
# ----------------------------------------------------------------------------
def _premodel_view_kernel(
    xe_ref,       # [N+E, F+Fe] bf16  masked node||edge features (this view)
    src_c_ref,    # [E, 1]  int32 edge source node ids (column layout)
    dst_c_ref,    # [E, 1]  int32 edge destination node ids (column layout)
    dst_r_ref,    # [1, E]  int32 edge destination node ids (row layout)
    batch_r_ref,  # [1, N]  int32 graph id per node
    w_in_ref,     # [F+Fe, H] bf16  row-stacked node/edge projection weight
    node_b_ref, edge_b_ref,        # [1, H] f32
    conv_w_ref,   # [L, H, H] bf16
    conv_b_ref,   # [L, 1, H] f32
    w01_ref,      # [H, feat] bf16  (feat_lin folded into out_lin[0])
    b01_ref,      # [1, feat] f32
    out2_w_ref,   # [feat, 128] bf16 (lane padded)
    out2_b_ref,   # [1, 128]   f32  (lane padded)
    out_ref,      # [G, 128]   f32  (lane padded)
    *, num_layers):
  f32 = jnp.float32
  bf16 = jnp.bfloat16
  n = batch_r_ref.shape[1]
  ecnt = src_c_ref.shape[0]
  g = out_ref.shape[0]

  # ---- fused node+edge input projection: one MXU pass, split after ReLU ----
  hh = jnp.dot(xe_ref[...], w_in_ref[...], preferred_element_type=f32)
  h = jnp.maximum(hh[:n] + node_b_ref[...], 0.0)              # [N, H]
  e = jnp.maximum(hh[n:] + edge_b_ref[...], 0.0)              # [E, H]

  # ---- structure matrices (iota compares -> bf16 one-hots, no bool masks) --
  col_nodes = jax.lax.broadcasted_iota(jnp.int32, (ecnt, n), 1)
  gather_src = (src_c_ref[...] == col_nodes).astype(bf16)     # [E, N]
  dst_oh = (dst_c_ref[...] == col_nodes).astype(bf16)         # [E, N]
  row_nodes = jax.lax.broadcasted_iota(jnp.int32, (n, ecnt), 0)
  scatter_dst = (row_nodes == dst_r_ref[...]).astype(bf16)    # [N, E]
  row_graphs = jax.lax.broadcasted_iota(jnp.int32, (g, n), 0)
  pool = (row_graphs == batch_r_ref[...]).astype(f32)         # [G, N]
  inv_cnt = 1.0 / jnp.maximum(jnp.sum(pool, axis=1, keepdims=True), 1.0)
  pool_s = (pool * inv_cnt).astype(bf16)                      # pre-scaled mean pool

  # ---- residual graph-conv layers (GENConv-style softmax aggregation) ------
  def layer_body(layer, h):
    # gather of source node features expressed as a one-hot matmul (MXU)
    h_src = jnp.dot(gather_src, h.astype(bf16), preferred_element_type=f32)
    msg = jnp.maximum(h_src + e, 0.0)                         # [E, H], >= 0
    # per-destination softmax shift; msg >= 0 so 0 is a valid max-neutral
    row_max = jnp.max(msg, axis=1, keepdims=True)             # [E, 1]
    m_node = jnp.max(dst_oh * row_max, axis=0, keepdims=True)  # [1, N]
    m_edge = jnp.max(dst_oh * m_node, axis=1, keepdims=True)   # [E, 1]
    exp_m = jnp.exp(msg - m_edge)                             # [E, H]
    # two matmuls sharing the same scatter LHS (lane-aligned, no concat/split)
    denom = jnp.dot(scatter_dst, exp_m.astype(bf16),
                    preferred_element_type=f32)               # [N, H]
    numer = jnp.dot(scatter_dst, (exp_m * msg).astype(bf16),
                    preferred_element_type=f32)               # [N, H]
    inv = pl.reciprocal(denom + 1e-9, approx=True)
    agg = jnp.where(denom > 0.0, numer * inv, 0.0)            # zero in-degree -> 0
    upd = jnp.dot(agg.astype(bf16), conv_w_ref[layer],
                  preferred_element_type=f32)
    upd = jnp.maximum(upd + conv_b_ref[layer], 0.0)
    return h + upd                                            # residual

  h = jax.lax.fori_loop(0, num_layers, layer_body, h)

  # ---- global mean pool + (feat_lin folded into out1) + out2, lane padded --
  pooled = jnp.dot(pool_s, h.astype(bf16), preferred_element_type=f32)  # [G, H]
  z = jnp.dot(pooled.astype(bf16), w01_ref[...],
              preferred_element_type=f32) + b01_ref[...]
  z = jnp.maximum(z, 0.0)
  z = jnp.dot(z.astype(bf16), out2_w_ref[...],
              preferred_element_type=f32) + out2_b_ref[...]
  out_ref[...] = z


def _estimate_vmem_bytes(n, ecnt, g, k_in, hidden, feat_dim, num_layers):
  """Rough resident-VMEM footprint of one grid step, plus headroom."""
  bf, f4 = 2, 4
  rows = n + ecnt
  io = 2 * (rows * k_in * bf + g * _LANE * f4)                 # double-buffered
  weights = ((k_in + num_layers * hidden + feat_dim) * hidden * bf
             + feat_dim * _LANE * bf
             + (num_layers + 3) * hidden * f4 + _LANE * f4)
  structure = 3 * ecnt * n * bf + g * n * f4
  temps = (8 * ecnt * hidden + 6 * n * hidden) * f4 + 2 * ecnt * n * f4
  total = io + weights + structure + temps + (4 << 20)
  return int(min(max(total, 32 << 20), 64 << 20))


def premodel_pallas_call(xe_views, src, dst, batch, prep, *, num_layers,
                         num_graphs):
  _, rows, k_in = xe_views.shape
  n = batch.shape[0]
  ecnt = src.shape[0]
  hidden = prep["node_b"].shape[1]
  feat_dim = prep["w01"].shape[1]

  kernel = functools.partial(_premodel_view_kernel, num_layers=num_layers)

  def full(shape):
    return pl.BlockSpec(shape, lambda v, _nd=len(shape): (0,) * _nd)

  src_c = src[:, None].astype(jnp.int32)
  dst_c = dst[:, None].astype(jnp.int32)
  dst_r = dst[None, :].astype(jnp.int32)
  batch_r = batch[None, :].astype(jnp.int32)

  args = (xe_views, src_c, dst_c, dst_r, batch_r,
          prep["w_in"], prep["node_b"], prep["edge_b"],
          prep["conv_w"], prep["conv_b"],
          prep["w01"], prep["b01"], prep["out2_w"], prep["out2_b"])

  in_specs = [
      pl.BlockSpec((None, rows, k_in), lambda v: (v, 0, 0)),    # per-view block
      full(src_c.shape), full(dst_c.shape), full(dst_r.shape),
      full(batch_r.shape),
      full(prep["w_in"].shape), full(prep["node_b"].shape),
      full(prep["edge_b"].shape),
      full(prep["conv_w"].shape), full(prep["conv_b"].shape),
      full(prep["w01"].shape), full(prep["b01"].shape),
      full(prep["out2_w"].shape), full(prep["out2_b"].shape),
  ]
  out_spec = pl.BlockSpec((None, num_graphs, _LANE), lambda v: (v, 0, 0))

  return pl.pallas_call(
      kernel,
      grid=(2,),                                  # one program per view (2 TCs on v7x)
      out_shape=jax.ShapeDtypeStruct((2, num_graphs, _LANE), jnp.float32),
      in_specs=in_specs,
      out_specs=out_spec,
      compiler_params=pltpu.CompilerParams(
          dimension_semantics=("parallel",),
          vmem_limit_bytes=_estimate_vmem_bytes(
              n, ecnt, num_graphs, k_in, hidden, feat_dim, num_layers)),
  )(*args)


# ----------------------------------------------------------------------------
# JAX glue: random masking (torch.randperm equivalent) + per-view input build.
# ----------------------------------------------------------------------------
def encoding_mask_noise(feats, key, mask_rate):
  """Zero out `mask_rate` fraction of the rows of `feats` (random perm)."""
  n = feats.shape[0]
  perm = jax.random.permutation(key, n)
  num_mask = int(mask_rate * n)
  mask_idx = perm[:num_mask]
  mask = jnp.zeros((n,), jnp.bool_).at[mask_idx].set(True)
  return jnp.where(mask[:, None], 0.0, feats)


def build_view_inputs(x_nodes, edge_attr, key, mask_rate):
  """Mask node & edge features for the two views; pack each view's node and
  edge features into one zero-padded [N+E, F+Fe] slab so the kernel projects
  both with a single MXU pass against the row-stacked weight."""
  n, f_node = x_nodes.shape
  ecnt, f_edge = edge_attr.shape
  k1, k2, k3, k4 = jax.random.split(key, 4)

  def one_view(kx, ke):
    x_m = encoding_mask_noise(x_nodes, kx, mask_rate)
    e_m = encoding_mask_noise(edge_attr, ke, mask_rate)
    xe = jnp.zeros((n + ecnt, f_node + f_edge), jnp.float32)
    xe = xe.at[:n, :f_node].set(x_m)
    xe = xe.at[n:, f_node:].set(e_m)
    return xe

  return jnp.stack([one_view(k1, k2), one_view(k3, k4)],
                   axis=0).astype(jnp.bfloat16)


@functools.partial(jax.jit, static_argnames=("num_layers", "num_graphs",
                                              "out_dim", "mask_rate"))
def premodel_forward(prep, x_nodes, edge_index, edge_attr, batch, key, *,
                     num_layers, num_graphs, out_dim, mask_rate=0.5):
  xe_views = build_view_inputs(x_nodes, edge_attr, key, mask_rate)
  src, dst = edge_index[0], edge_index[1]
  out = premodel_pallas_call(xe_views, src, dst, batch, prep,
                             num_layers=num_layers, num_graphs=num_graphs)
  return out[0, :, :out_dim], out[1, :, :out_dim]


# ----------------------------------------------------------------------------
# Parameters (f32 masters + hoisted/folded bf16/f32 prepared copies).
# ----------------------------------------------------------------------------
def init_params(key, in_dim, enc_num_hidden, num_layers, feat_dim,
                in_edge_channel):
  params = {}
  keys = jax.random.split(key, 8 + num_layers)

  def dense(k, fan_in, fan_out):
    scale = 1.0 / jnp.sqrt(jnp.float32(fan_in))
    return jax.random.normal(k, (fan_in, fan_out), jnp.float32) * scale

  params["node_w"] = dense(keys[0], in_dim, enc_num_hidden)
  params["node_b"] = jnp.zeros((enc_num_hidden,), jnp.float32)
  params["edge_w"] = dense(keys[1], in_edge_channel, enc_num_hidden)
  params["edge_b"] = jnp.zeros((enc_num_hidden,), jnp.float32)
  for layer in range(num_layers):
    params[f"conv{layer}_w"] = dense(keys[2 + layer], enc_num_hidden,
                                     enc_num_hidden)
    params[f"conv{layer}_b"] = jnp.zeros((enc_num_hidden,), jnp.float32)
  params["feat_w"] = dense(keys[2 + num_layers], enc_num_hidden, feat_dim)
  params["feat_b"] = jnp.zeros((feat_dim,), jnp.float32)
  params["out1_w"] = dense(keys[3 + num_layers], feat_dim, feat_dim)
  params["out1_b"] = jnp.zeros((feat_dim,), jnp.float32)
  params["out2_w"] = dense(keys[4 + num_layers], feat_dim, feat_dim // 2)
  params["out2_b"] = jnp.zeros((feat_dim // 2,), jnp.float32)
  return params


def prepare_params(params, num_layers):
  """Hoist casts/reshapes, fold feat_lin into out_lin[0], lane-pad out_lin[1]."""
  bf16, f32 = jnp.bfloat16, jnp.float32
  w01 = params["feat_w"] @ params["out1_w"]                    # fold feat_lin
  b01 = params["feat_b"] @ params["out1_w"] + params["out1_b"]
  feat_dim, out_dim = params["out2_w"].shape
  out2_w = jnp.zeros((feat_dim, _LANE), f32).at[:, :out_dim].set(
      params["out2_w"])
  out2_b = jnp.zeros((_LANE,), f32).at[:out_dim].set(params["out2_b"])
  return {
      "w_in": jnp.concatenate([params["node_w"], params["edge_w"]],
                              axis=0).astype(bf16),
      "node_b": params["node_b"].reshape(1, -1).astype(f32),
      "edge_b": params["edge_b"].reshape(1, -1).astype(f32),
      "conv_w": jnp.stack([params[f"conv{l}_w"] for l in range(num_layers)]
                          ).astype(bf16),
      "conv_b": jnp.stack([params[f"conv{l}_b"].reshape(1, -1)
                           for l in range(num_layers)]).astype(f32),
      "w01": w01.astype(bf16),
      "b01": b01.reshape(1, -1).astype(f32),
      "out2_w": out2_w.astype(bf16),
      "out2_b": out2_b.reshape(1, -1).astype(f32),
  }


# ----------------------------------------------------------------------------
# Pure-JAX f32 reference of the same math (loose numerical cross-check).
# ----------------------------------------------------------------------------
def reference_forward_view(params, x_m, e_m, src, dst, batch, *,
                           num_layers, num_graphs):
  f32 = jnp.float32
  h = jax.nn.relu(x_m @ params["node_w"] + params["node_b"])
  e = jax.nn.relu(e_m @ params["edge_w"] + params["edge_b"])
  n = x_m.shape[0]
  scatter = jax.nn.one_hot(dst, n, dtype=f32).T                # [N, E]
  for layer in range(num_layers):
    msg = jax.nn.relu(h[src] + e)
    m_node = jnp.maximum(
        jax.ops.segment_max(jnp.max(msg, axis=1), dst, num_segments=n), 0.0)
    m_edge = m_node[dst][:, None]
    exp_m = jnp.exp(msg - m_edge)
    denom = scatter @ exp_m
    numer = scatter @ (exp_m * msg)
    agg = jnp.where(denom > 0.0, numer / (denom + 1e-9), 0.0)
    upd = jax.nn.relu(agg @ params[f"conv{layer}_w"] + params[f"conv{layer}_b"])
    h = h + upd
  pool = jax.nn.one_hot(batch, num_graphs, dtype=f32).T
  counts = jnp.maximum(pool.sum(axis=1, keepdims=True), 1.0)
  pooled = (pool @ h) / counts
  z = pooled @ params["feat_w"] + params["feat_b"]
  z = jax.nn.relu(z @ params["out1_w"] + params["out1_b"])
  z = z @ params["out2_w"] + params["out2_b"]
  return z


# ----------------------------------------------------------------------------
# Driver
# ----------------------------------------------------------------------------
if __name__ == "__main__":
  # Model hyper-parameters (small, consistent with PreModel.__init__)
  in_dim = 16
  enc_num_hidden = 32
  num_layers = 2
  feat_dim = 32
  in_edge_channel = 11
  mask_rate = 0.5
  out_dim = feat_dim // 2

  # Small synthetic graph batch: 2 graphs, 16 nodes, 24 directed edges.
  num_nodes = 16
  num_edges = 24
  num_graphs = 2

  root = jax.random.PRNGKey(0)
  k_x, k_ea, k_src, k_dst, k_param, k_mask = jax.random.split(root, 6)

  x_nodes = jax.random.normal(k_x, (num_nodes, in_dim), jnp.float32)
  edge_attr = jax.random.normal(k_ea, (num_edges, in_edge_channel),
                                jnp.float32)
  src = jax.random.randint(k_src, (num_edges,), 0, num_nodes, jnp.int32)
  dst = jax.random.randint(k_dst, (num_edges,), 0, num_nodes, jnp.int32)
  edge_index = jnp.stack([src, dst], axis=0)                   # [2, E]
  batch = jnp.concatenate([
      jnp.zeros((num_nodes // 2,), jnp.int32),
      jnp.ones((num_nodes - num_nodes // 2,), jnp.int32),
  ])                                                           # [N]

  params = init_params(k_param, in_dim, enc_num_hidden, num_layers,
                       feat_dim, in_edge_channel)
  prep = prepare_params(params, num_layers)

  ri_out, rj_out = premodel_forward(
      prep, x_nodes, edge_index, edge_attr, batch, k_mask,
      num_layers=num_layers, num_graphs=num_graphs, out_dim=out_dim,
      mask_rate=mask_rate)
  ri_out = jax.block_until_ready(ri_out)
  rj_out = jax.block_until_ready(rj_out)

  assert ri_out.shape == (num_graphs, out_dim)
  assert rj_out.shape == (num_graphs, out_dim)
  assert jnp.all(jnp.isfinite(ri_out)) and jnp.all(jnp.isfinite(rj_out))

  # Loose cross-check vs a pure-JAX f32 reference (kernel uses bf16 MXU
  # operands + approx reciprocal, so tolerances are generous).
  xe_views = build_view_inputs(x_nodes, edge_attr, k_mask, mask_rate)
  refs = []
  for v in range(2):
    x_m = xe_views[v, :num_nodes, :in_dim].astype(jnp.float32)
    e_m = xe_views[v, num_nodes:, in_dim:].astype(jnp.float32)
    refs.append(reference_forward_view(
        params, x_m, e_m, src, dst, batch,
        num_layers=num_layers, num_graphs=num_graphs))
  ref = jnp.concatenate(refs, axis=0)
  got = jnp.concatenate([ri_out, rj_out], axis=0)
  assert jnp.allclose(got, ref, atol=1.5e-1, rtol=1.5e-1), (
      float(jnp.max(jnp.abs(got - ref))))

  print("KERNEL_OK")
</pallas_src>

<mosaic_0001>
module attributes {stable_mosaic.version = 11 : i64} {
  func.func @_premodel_view_kernel(%arg0: i32, %arg1: memref<1x40x27xbf16, #tpu.memory_space<vmem>>, %arg2: memref<24x1xi32, #tpu.memory_space<vmem>>, %arg3: memref<24x1xi32, #tpu.memory_space<vmem>>, %arg4: memref<1x24xi32, #tpu.memory_space<vmem>>, %arg5: memref<1x16xi32, #tpu.memory_space<vmem>>, %arg6: memref<27x32xbf16, #tpu.memory_space<vmem>>, %arg7: memref<1x32xf32, #tpu.memory_space<vmem>>, %arg8: memref<1x32xf32, #tpu.memory_space<vmem>>, %arg9: memref<2x32x32xbf16, #tpu.memory_space<vmem>>, %arg10: memref<2x1x32xf32, #tpu.memory_space<vmem>>, %arg11: memref<32x32xbf16, #tpu.memory_space<vmem>>, %arg12: memref<1x32xf32, #tpu.memory_space<vmem>>, %arg13: memref<32x128xbf16, #tpu.memory_space<vmem>>, %arg14: memref<1x128xf32, #tpu.memory_space<vmem>>, %arg15: memref<1x2x128xf32, #tpu.memory_space<vmem>>) attributes {dimension_semantics = [#tpu.dimension_semantics<parallel>], iteration_bounds = array<i64: 2>, scalar_prefetch = 0 : i64, scratch_operands = 0 : i64, tpu.core_type = #tpu.core_type<tc>, window_params = [{transform_indices = @transform_0, window_bounds = array<i64: 1, 40, 27>}, {pipeline_mode = #tpu.pipeline_mode<synchronous>, transform_indices = @transform_1, window_bounds = array<i64: 24, 1>}, {pipeline_mode = #tpu.pipeline_mode<synchronous>, transform_indices = @transform_2, window_bounds = array<i64: 24, 1>}, {pipeline_mode = #tpu.pipeline_mode<synchronous>, transform_indices = @transform_3, window_bounds = array<i64: 1, 24>}, {pipeline_mode = #tpu.pipeline_mode<synchronous>, transform_indices = @transform_4, window_bounds = array<i64: 1, 16>}, {pipeline_mode = #tpu.pipeline_mode<synchronous>, transform_indices = @transform_5, window_bounds = array<i64: 27, 32>}, {pipeline_mode = #tpu.pipeline_mode<synchronous>, transform_indices = @transform_6, window_bounds = array<i64: 1, 32>}, {pipeline_mode = #tpu.pipeline_mode<synchronous>, transform_indices = @transform_7, window_bounds = array<i64: 1, 32>}, {pipeline_mode = #tpu.pipeline_mode<synchronous>, transform_indices = @transform_8, window_bounds = array<i64: 2, 32, 32>}, {pipeline_mode = #tpu.pipeline_mode<synchronous>, transform_indices = @transform_9, window_bounds = array<i64: 2, 1, 32>}, {pipeline_mode = #tpu.pipeline_mode<synchronous>, transform_indices = @transform_10, window_bounds = array<i64: 32, 32>}, {pipeline_mode = #tpu.pipeline_mode<synchronous>, transform_indices = @transform_11, window_bounds = array<i64: 1, 32>}, {pipeline_mode = #tpu.pipeline_mode<synchronous>, transform_indices = @transform_12, window_bounds = array<i64: 32, 128>}, {pipeline_mode = #tpu.pipeline_mode<synchronous>, transform_indices = @transform_13, window_bounds = array<i64: 1, 128>}, {transform_indices = @transform_14, window_bounds = array<i64: 1, 2, 128>}]} {
    %c0 = arith.constant 0 : index
    %c0_0 = arith.constant 0 : index
    %c0_1 = arith.constant 0 : index
    %0 = vector.load %arg1[%c0, %c0_0, %c0_1] : memref<1x40x27xbf16, #tpu.memory_space<vmem>>, vector<1x40x27xbf16>
    %1 = vector.shape_cast %0 : vector<1x40x27xbf16> to vector<40x27xbf16>
    %c0_2 = arith.constant 0 : index
    %c0_3 = arith.constant 0 : index
    %2 = vector.load %arg6[%c0_2, %c0_3] : memref<27x32xbf16, #tpu.memory_space<vmem>>, vector<27x32xbf16>
    %cst = arith.constant dense<0.000000e+00> : vector<40x32xf32>
    %3 = tpu.matmul %1, %2, %cst {dimension_numbers = #tpu.dot_dimension_numbers<[1], [0], [0], [1], [0, 0, 1, 1], [], []>} : vector<40x27xbf16>, vector<27x32xbf16>, vector<40x32xf32> -> vector<40x32xf32>
    %4 = vector.extract_strided_slice %3 {offsets = [0, 0], sizes = [16, 32], strides = [1, 1]} : vector<40x32xf32> to vector<16x32xf32>
    %c0_4 = arith.constant 0 : index
    %c0_5 = arith.constant 0 : index
    %5 = vector.load %arg7[%c0_4, %c0_5] : memref<1x32xf32, #tpu.memory_space<vmem>>, vector<1x32xf32>
    %6 = vector.broadcast %5 : vector<1x32xf32> to vector<16x32xf32>
    %7 = arith.addf %4, %6 : vector<16x32xf32>
    %cst_6 = arith.constant 0.000000e+00 : f32
    %8 = vector.broadcast %cst_6 : f32 to vector<16x32xf32>
    %9 = arith.maximumf %7, %8 : vector<16x32xf32>
    %10 = vector.extract_strided_slice %3 {offsets = [16, 0], sizes = [24, 32], strides = [1, 1]} : vector<40x32xf32> to vector<24x32xf32>
    %c0_7 = arith.constant 0 : index
    %c0_8 = arith.constant 0 : index
    %11 = vector.load %arg8[%c0_7, %c0_8] : memref<1x32xf32, #tpu.memory_space<vmem>>, vector<1x32xf32>
    %12 = vector.broadcast %11 : vector<1x32xf32> to vector<24x32xf32>
    %13 = arith.addf %10, %12 : vector<24x32xf32>
    %cst_9 = arith.constant 0.000000e+00 : f32
    %14 = vector.broadcast %cst_9 : f32 to vector<24x32xf32>
    %15 = arith.maximumf %13, %14 : vector<24x32xf32>
    %16 = tpu.iota {dimensions = array<i32: 1>} : vector<24x16xi32>
    %c0_10 = arith.constant 0 : index
    %c0_11 = arith.constant 0 : index
    %17 = vector.load %arg2[%c0_10, %c0_11] : memref<24x1xi32, #tpu.memory_space<vmem>>, vector<24x1xi32>
    %18 = vector.broadcast %17 : vector<24x1xi32> to vector<24x16xi32>
    %19 = arith.cmpi eq, %18, %16 : vector<24x16xi32>
    %20 = arith.extui %19 : vector<24x16xi1> to vector<24x16xi32>
    %21 = arith.sitofp %20 : vector<24x16xi32> to vector<24x16xf32>
    %22 = arith.truncf %21 : vector<24x16xf32> to vector<24x16xbf16>
    %c0_12 = arith.constant 0 : index
    %c0_13 = arith.constant 0 : index
    %23 = vector.load %arg3[%c0_12, %c0_13] : memref<24x1xi32, #tpu.memory_space<vmem>>, vector<24x1xi32>
    %24 = vector.broadcast %23 : vector<24x1xi32> to vector<24x16xi32>
    %25 = arith.cmpi eq, %24, %16 : vector<24x16xi32>
    %26 = arith.extui %25 : vector<24x16xi1> to vector<24x16xi32>
    %27 = arith.sitofp %26 : vector<24x16xi32> to vector<24x16xf32>
    %28 = arith.truncf %27 : vector<24x16xf32> to vector<24x16xbf16>
    %29 = tpu.iota {dimensions = array<i32: 0>} : vector<16x24xi32>
    %c0_14 = arith.constant 0 : index
    %c0_15 = arith.constant 0 : index
    %30 = vector.load %arg4[%c0_14, %c0_15] : memref<1x24xi32, #tpu.memory_space<vmem>>, vector<1x24xi32>
    %31 = vector.broadcast %30 : vector<1x24xi32> to vector<16x24xi32>
    %32 = arith.cmpi eq, %29, %31 : vector<16x24xi32>
    %33 = arith.extui %32 : vector<16x24xi1> to vector<16x24xi32>
    %34 = arith.sitofp %33 : vector<16x24xi32> to vector<16x24xf32>
    %35 = arith.truncf %34 : vector<16x24xf32> to vector<16x24xbf16>
    %36 = tpu.iota {dimensions = array<i32: 0>} : vector<2x16xi32>
    %c0_16 = arith.constant 0 : index
    %c0_17 = arith.constant 0 : index
    %37 = vector.load %arg5[%c0_16, %c0_17] : memref<1x16xi32, #tpu.memory_space<vmem>>, vector<1x16xi32>
    %38 = vector.broadcast %37 : vector<1x16xi32> to vector<2x16xi32>
    %39 = arith.cmpi eq, %36, %38 : vector<2x16xi32>
    %40 = arith.extui %39 : vector<2x16xi1> to vector<2x16xi32>
    %41 = arith.sitofp %40 : vector<2x16xi32> to vector<2x16xf32>
    %cst_18 = arith.constant dense<0.000000e+00> : vector<2xf32>
    %42 = vector.multi_reduction <add>, %41, %cst_18 [1] : vector<2x16xf32> to vector<2xf32>
    %43 = vector.shape_cast %42 : vector<2xf32> to vector<2x1xf32>
    %cst_19 = arith.constant 1.000000e+00 : f32
    %44 = vector.broadcast %cst_19 : f32 to vector<2x1xf32>
    %45 = arith.maximumf %43, %44 : vector<2x1xf32>
    %cst_20 = arith.constant 1.000000e+00 : f32
    %46 = vector.broadcast %cst_20 : f32 to vector<2x1xf32>
    %47 = arith.divf %46, %45 : vector<2x1xf32>
    %48 = vector.broadcast %47 : vector<2x1xf32> to vector<2x16xf32>
    %49 = arith.mulf %41, %48 : vector<2x16xf32>
    %50 = arith.truncf %49 : vector<2x16xf32> to vector<2x16xbf16>
    %c0_i32 = arith.constant 0 : i32
    %c2_i32 = arith.constant 2 : i32
    %51 = arith.addi %c0_i32, %c2_i32 : i32
    %c1_i32 = arith.constant 1 : i32
    %52 = scf.for %arg16 = %c0_i32 to %51 step %c1_i32 iter_args(%arg17 = %9) -> (vector<16x32xf32>)  : i32 {
      %72 = arith.truncf %arg17 : vector<16x32xf32> to vector<16x32xbf16>
      %cst_37 = arith.constant dense<0.000000e+00> : vector<24x32xf32>
      %73 = tpu.matmul %22, %72, %cst_37 {dimension_numbers = #tpu.dot_dimension_numbers<[1], [0], [0], [1], [0, 0, 1, 1], [], []>} : vector<24x16xbf16>, vector<16x32xbf16>, vector<24x32xf32> -> vector<24x32xf32>
      %74 = arith.addf %73, %15 : vector<24x32xf32>
      %cst_38 = arith.constant 0.000000e+00 : f32
      %75 = vector.broadcast %cst_38 : f32 to vector<24x32xf32>
      %76 = arith.maximumf %74, %75 : vector<24x32xf32>
      %cst_39 = arith.constant dense<0xFF800000> : vector<24xf32>
      %77 = vector.multi_reduction <maximumf>, %76, %cst_39 [1] : vector<24x32xf32> to vector<24xf32>
      %78 = vector.shape_cast %77 : vector<24xf32> to vector<24x1xf32>
      %79 = arith.extf %28 : vector<24x16xbf16> to vector<24x16xf32>
      %80 = vector.broadcast %78 : vector<24x1xf32> to vector<24x16xf32>
      %81 = arith.mulf %79, %80 : vector<24x16xf32>
      %cst_40 = arith.constant dense<0xFF800000> : vector<16xf32>
      %82 = vector.multi_reduction <maximumf>, %81, %cst_40 [0] : vector<24x16xf32> to vector<16xf32>
      %83 = vector.shape_cast %82 : vector<16xf32> to vector<1x16xf32>
      %84 = arith.extf %28 : vector<24x16xbf16> to vector<24x16xf32>
      %85 = vector.broadcast %83 : vector<1x16xf32> to vector<24x16xf32>
      %86 = arith.mulf %84, %85 : vector<24x16xf32>
      %cst_41 = arith.constant dense<0xFF800000> : vector<24xf32>
      %87 = vector.multi_reduction <maximumf>, %86, %cst_41 [1] : vector<24x16xf32> to vector<24xf32>
      %88 = vector.shape_cast %87 : vector<24xf32> to vector<24x1xf32>
      %89 = vector.broadcast %88 : vector<24x1xf32> to vector<24x32xf32>
      %90 = arith.subf %76, %89 : vector<24x32xf32>
      %91 = math.exp %90 : vector<24x32xf32>
      %92 = arith.truncf %91 : vector<24x32xf32> to vector<24x32xbf16>
      %cst_42 = arith.constant dense<0.000000e+00> : vector<16x32xf32>
      %93 = tpu.matmul %35, %92, %cst_42 {dimension_numbers = #tpu.dot_dimension_numbers<[1], [0], [0], [1], [0, 0, 1, 1], [], []>} : vector<16x24xbf16>, vector<24x32xbf16>, vector<16x32xf32> -> vector<16x32xf32>
      %94 = arith.mulf %91, %76 : vector<24x32xf32>
      %95 = arith.truncf %94 : vector<24x32xf32> to vector<24x32xbf16>
      %cst_43 = arith.constant dense<0.000000e+00> : vector<16x32xf32>
      %96 = tpu.matmul %35, %95, %cst_43 {dimension_numbers = #tpu.dot_dimension_numbers<[1], [0], [0], [1], [0, 0, 1, 1], [], []>} : vector<16x24xbf16>, vector<24x32xbf16>, vector<16x32xf32> -> vector<16x32xf32>
      %cst_44 = arith.constant 9.99999971E-10 : f32
      %97 = vector.broadcast %cst_44 : f32 to vector<16x32xf32>
      %98 = arith.addf %93, %97 : vector<16x32xf32>
      %99 = tpu.reciprocal %98 {approx = true} : vector<16x32xf32> -> vector<16x32xf32>
      %cst_45 = arith.constant 0.000000e+00 : f32
      %100 = vector.broadcast %cst_45 : f32 to vector<16x32xf32>
      %101 = arith.cmpf ogt, %93, %100 : vector<16x32xf32>
      %102 = arith.mulf %96, %99 : vector<16x32xf32>
      %cst_46 = arith.constant 0.000000e+00 : f32
      %103 = vector.broadcast %cst_46 : f32 to vector<16x32xf32>
      %104 = arith.select %101, %102, %103 : vector<16x32xi1>, vector<16x32xf32>
      %105 = arith.truncf %104 : vector<16x32xf32> to vector<16x32xbf16>
      %106 = arith.index_cast %arg16 : i32 to index
      %c0_47 = arith.constant 0 : index
      %c0_48 = arith.constant 0 : index
      %107 = vector.load %arg9[%106, %c0_47, %c0_48] : memref<2x32x32xbf16, #tpu.memory_space<vmem>>, vector<1x32x32xbf16>
      %108 = vector.shape_cast %107 : vector<1x32x32xbf16> to vector<32x32xbf16>
      %cst_49 = arith.constant dense<0.000000e+00> : vector<16x32xf32>
      %109 = tpu.matmul %105, %108, %cst_49 {dimension_numbers = #tpu.dot_dimension_numbers<[1], [0], [0], [1], [0, 0, 1, 1], [], []>} : vector<16x32xbf16>, vector<32x32xbf16>, vector<16x32xf32> -> vector<16x32xf32>
      %110 = arith.index_cast %arg16 : i32 to index
      %c0_50 = arith.constant 0 : index
      %c0_51 = arith.constant 0 : index
      %111 = vector.load %arg10[%110, %c0_50, %c0_51] : memref<2x1x32xf32, #tpu.memory_space<vmem>>, vector<1x1x32xf32>
      %112 = vector.shape_cast %111 : vector<1x1x32xf32> to vector<1x32xf32>
      %113 = vector.broadcast %112 : vector<1x32xf32> to vector<16x32xf32>
      %114 = arith.addf %109, %113 : vector<16x32xf32>
      %cst_52 = arith.constant 0.000000e+00 : f32
      %115 = vector.broadcast %cst_52 : f32 to vector<16x32xf32>
      %116 = arith.maximumf %114, %115 : vector<16x32xf32>
      %117 = arith.addf %arg17, %116 : vector<16x32xf32>
      scf.yield %117 : vector<16x32xf32>
    }
    %c2_i32_21 = arith.constant 2 : i32
    %53 = arith.truncf %52 : vector<16x32xf32> to vector<16x32xbf16>
    %cst_22 = arith.constant dense<0.000000e+00> : vector<2x32xf32>
    %54 = tpu.matmul %50, %53, %cst_22 {dimension_numbers = #tpu.dot_dimension_numbers<[1], [0], [0], [1], [0, 0, 1, 1], [], []>} : vector<2x16xbf16>, vector<16x32xbf16>, vector<2x32xf32> -> vector<2x32xf32>
    %55 = arith.truncf %54 : vector<2x32xf32> to vector<2x32xbf16>
    %c0_23 = arith.constant 0 : index
    %c0_24 = arith.constant 0 : index
    %56 = vector.load %arg11[%c0_23, %c0_24] : memref<32x32xbf16, #tpu.memory_space<vmem>>, vector<32x32xbf16>
    %cst_25 = arith.constant dense<0.000000e+00> : vector<2x32xf32>
    %57 = tpu.matmul %55, %56, %cst_25 {dimension_numbers = #tpu.dot_dimension_numbers<[1], [0], [0], [1], [0, 0, 1, 1], [], []>} : vector<2x32xbf16>, vector<32x32xbf16>, vector<2x32xf32> -> vector<2x32xf32>
    %c0_26 = arith.constant 0 : index
    %c0_27 = arith.constant 0 : index
    %58 = vector.load %arg12[%c0_26, %c0_27] : memref<1x32xf32, #tpu.memory_space<vmem>>, vector<1x32xf32>
    %59 = vector.broadcast %58 : vector<1x32xf32> to vector<2x32xf32>
    %60 = arith.addf %57, %59 : vector<2x32xf32>
    %cst_28 = arith.constant 0.000000e+00 : f32
    %61 = vector.broadcast %cst_28 : f32 to vector<2x32xf32>
    %62 = arith.maximumf %60, %61 : vector<2x32xf32>
    %63 = arith.truncf %62 : vector<2x32xf32> to vector<2x32xbf16>
    %c0_29 = arith.constant 0 : index
    %c0_30 = arith.constant 0 : index
    %64 = vector.load %arg13[%c0_29, %c0_30] : memref<32x128xbf16, #tpu.memory_space<vmem>>, vector<32x128xbf16>
    %cst_31 = arith.constant dense<0.000000e+00> : vector<2x128xf32>
    %65 = tpu.matmul %63, %64, %cst_31 {dimension_numbers = #tpu.dot_dimension_numbers<[1], [0], [0], [1], [0, 0, 1, 1], [], []>} : vector<2x32xbf16>, vector<32x128xbf16>, vector<2x128xf32> -> vector<2x128xf32>
    %c0_32 = arith.constant 0 : index
    %c0_33 = arith.constant 0 : index
    %66 = vector.load %arg14[%c0_32, %c0_33] : memref<1x128xf32, #tpu.memory_space<vmem>>, vector<1x128xf32>
    %67 = vector.broadcast %66 : vector<1x128xf32> to vector<2x128xf32>
    %68 = arith.addf %65, %67 : vector<2x128xf32>
    %c0_34 = arith.constant 0 : index
    %c0_35 = arith.constant 0 : index
    %c0_36 = arith.constant 0 : index
    %69 = vector.load %arg15[%c0_34, %c0_35, %c0_36] : memref<1x2x128xf32, #tpu.memory_space<vmem>>, vector<1x2x128xf32>
    %70 = vector.shape_cast %69 : vector<1x2x128xf32> to vector<2x128xf32>
    %71 = vector.shape_cast %68 : vector<2x128xf32> to vector<1x2x128xf32>
    tpu.vector_store %arg15[%c0_34, %c0_35, %c0_36], %71 {strides = array<i32>} : memref<1x2x128xf32, #tpu.memory_space<vmem>>, vector<1x2x128xf32>,
    return
  }
  func.func @transform_0(%arg0: i32) -> (i32, i32, i32) {
    %c0_i32 = arith.constant 0 : i32
    %c0_i32_0 = arith.constant 0 : i32
    %c0_i32_1 = arith.constant 0 : i32
    return %arg0, %c0_i32, %c0_i32_0 : i32, i32, i32
  }
  func.func @transform_1(%arg0: i32) -> (i32, i32) {
    %c0_i32 = arith.constant 0 : i32
    %c0_i32_0 = arith.constant 0 : i32
    %c0_i32_1 = arith.constant 0 : i32
    return %c0_i32, %c0_i32_0 : i32, i32
  }
  func.func @transform_2(%arg0: i32) -> (i32, i32) {
    %c0_i32 = arith.constant 0 : i32
    %c0_i32_0 = arith.constant 0 : i32
    %c0_i32_1 = arith.constant 0 : i32
    return %c0_i32, %c0_i32_0 : i32, i32
  }
  func.func @transform_3(%arg0: i32) -> (i32, i32) {
    %c0_i32 = arith.constant 0 : i32
    %c0_i32_0 = arith.constant 0 : i32
    %c0_i32_1 = arith.constant 0 : i32
    return %c0_i32, %c0_i32_0 : i32, i32
  }
  func.func @transform_4(%arg0: i32) -> (i32, i32) {
    %c0_i32 = arith.constant 0 : i32
    %c0_i32_0 = arith.constant 0 : i32
    %c0_i32_1 = arith.constant 0 : i32
    return %c0_i32, %c0_i32_0 : i32, i32
  }
  func.func @transform_5(%arg0: i32) -> (i32, i32) {
    %c0_i32 = arith.constant 0 : i32
    %c0_i32_0 = arith.constant 0 : i32
    %c0_i32_1 = arith.constant 0 : i32
    return %c0_i32, %c0_i32_0 : i32, i32
  }
  func.func @transform_6(%arg0: i32) -> (i32, i32) {
    %c0_i32 = arith.constant 0 : i32
    %c0_i32_0 = arith.constant 0 : i32
    %c0_i32_1 = arith.constant 0 : i32
    return %c0_i32, %c0_i32_0 : i32, i32
  }
  func.func @transform_7(%arg0: i32) -> (i32, i32) {
    %c0_i32 = arith.constant 0 : i32
    %c0_i32_0 = arith.constant 0 : i32
    %c0_i32_1 = arith.constant 0 : i32
    return %c0_i32, %c0_i32_0 : i32, i32
  }
  func.func @transform_8(%arg0: i32) -> (i32, i32, i32) {
    %c0_i32 = arith.constant 0 : i32
    %c0_i32_0 = arith.constant 0 : i32
    %c0_i32_1 = arith.constant 0 : i32
    %c0_i32_2 = arith.constant 0 : i32
    return %c0_i32, %c0_i32_0, %c0_i32_1 : i32, i32, i32
  }
  func.func @transform_9(%arg0: i32) -> (i32, i32, i32) {
    %c0_i32 = arith.constant 0 : i32
    %c0_i32_0 = arith.constant 0 : i32
    %c0_i32_1 = arith.constant 0 : i32
    %c0_i32_2 = arith.constant 0 : i32
    return %c0_i32, %c0_i32_0, %c0_i32_1 : i32, i32, i32
  }
  func.func @transform_10(%arg0: i32) -> (i32, i32) {
    %c0_i32 = arith.constant 0 : i32
    %c0_i32_0 = arith.constant 0 : i32
    %c0_i32_1 = arith.constant 0 : i32
    return %c0_i32, %c0_i32_0 : i32, i32
  }
  func.func @transform_11(%arg0: i32) -> (i32, i32) {
    %c0_i32 = arith.constant 0 : i32
    %c0_i32_0 = arith.constant 0 : i32
    %c0_i32_1 = arith.constant 0 : i32
    return %c0_i32, %c0_i32_0 : i32, i32
  }
  func.func @transform_12(%arg0: i32) -> (i32, i32) {
    %c0_i32 = arith.constant 0 : i32
    %c0_i32_0 = arith.constant 0 : i32
    %c0_i32_1 = arith.constant 0 : i32
    return %c0_i32, %c0_i32_0 : i32, i32
  }
  func.func @transform_13(%arg0: i32) -> (i32, i32) {
    %c0_i32 = arith.constant 0 : i32
    %c0_i32_0 = arith.constant 0 : i32
    %c0_i32_1 = arith.constant 0 : i32
    return %c0_i32, %c0_i32_0 : i32, i32
  }
  func.func @transform_14(%arg0: i32) -> (i32, i32, i32) {
    %c0_i32 = arith.constant 0 : i32
    %c0_i32_0 = arith.constant 0 : i32
    %c0_i32_1 = arith.constant 0 : i32
    return %arg0, %c0_i32, %c0_i32_0 : i32, i32, i32
  }
}

</mosaic_0001>

<bundles_post_ra>
// kernel: premodel_forward.1
= control target key start
LH: loop header
LB: loop body
LE: loop exit
PB: predicated region body
PF: predicated region fallthrough
CT: control target
= control target key end

     0   :  { %s1551_s29 = smov 0   ;;  %s1769_s0 = inlined_call_operand.vmem [shape: bf16[2,40,27], index: 0, kind: input, shape index: {}]   ;;  %s1770_s1 = inlined_call_operand.vmem [shape: s32[24,1], index: 1, kind: input, shape index: {}]   ;;  %s1771_s2 = inlined_call_operand.vmem [shape: s32[24,1], index: 2, kind: input, shape index: {}]   ;;  %s1772_s3 = inlined_call_operand.vmem [shape: s32[1,24], index: 3, kind: input, shape index: {}]   ;;  %s1773_s4 = inlined_call_operand.vmem [shape: s32[1,16], index: 4, kind: input, shape index: {}]   ;;  %s1774_s5 = inlined_call_operand.vmem [shape: bf16[27,32], index: 5, kind: input, shape index: {}]   ;;  %s1775_s6 = inlined_call_operand.vmem [shape: f32[1,32], index: 6, kind: input, shape index: {}]   ;;  %s1776_s7 = inlined_call_operand.vmem [shape: f32[1,32], index: 7, kind: input, shape index: {}]   ;;  %s1777_s8 = inlined_call_operand.vmem [shape: bf16[2,32,32], index: 8, kind: input, shape index: {}]   ;;  %s1778_s9 = inlined_call_operand.vmem [shape: f32[2,1,32], index: 9, kind: input, shape index: {}]   ;;  %s1779_s10 = inlined_call_operand.vmem [shape: bf16[32,32], index: 10, kind: input, shape index: {}]   ;;  %s1780_s11 = inlined_call_operand.vmem [shape: f32[1,32], index: 11, kind: input, shape index: {}]   ;;  %s1781_s12 = inlined_call_operand.vmem [shape: bf16[32,128], index: 12, kind: input, shape index: {}]   ;;  %s1782_s13 = inlined_call_operand.vmem [shape: f32[1,128], index: 13, kind: input, shape index: {}]   ;;  %s1783_s14 = inlined_call_operand.vmem [shape: f32[2,2,128], index: 14, kind: output, shape index: {}]  }
   0x1 LB: > { %s1227_s30 = sadd.s32 4294967295, %s1456_s29   ;;  %p1231_p0 = scmp.ge.s32.totalorder %s1456_s29, 1  ;;  %s1456_s29 = sphi %s1551_s29, %s24_s29  }
   0x2   : > { %p412_p1 = scmp.lt.s32.totalorder %s1456_s29, 3 }
   0x4   : > { %p413_p2 = pnand %p1231_p0, %p412_p1 }
   0x5   : > { %p457_p3 = scmp.lt.s32.totalorder (!%p413_p2), %s1227_s30, 1  ;;  %s1660_s18 = smov (!%p413_p2), 0  }
   0x6   : > { %416 = sbr.rel (%p413_p2) target bundleno = 1786 (0x6fa), region = 76 }
   0xb   : > { %vm510_vm0 = vcmask 1044480   ;;  %v597_v0 = vlaneseq  ;;  %v1470_v1 = vmov 0.0   ;;  %v1415_v2 = vld [vmem:[%s1774_s5 + $0x8] sm:$0x3f]   ;;  %vm511_vm1 = vcmask 1045504   ;;  %s1787_s30 = smov (!%p457_p3, %s1227_s30), 1 }
   0xc   : > { %1370 = vmatprep.subr.bf16.mxu1 %v1470_v1  ;;  %1302 = vmatprep.subr.bf16.mxu0 %v1470_v1  ;;  %v1471_v3 = vmov 65535   ;;  %vm1472_vm2 = vmmov 0   ;;  %v1250_v7 = vld [vmem:[%s1772_s3] ss:$0 sm:$0xff]  ;;  %vm668_vm3 = vcmask 123904   ;;  %v1473_v11 = vmov 0  }
   0xd   : > { %v512_v4 = vsel %vm510_vm0, 4294967295, %v1471_v3  ;;  %1310 = vmatprep.mubr.msk.bf16.mxu1 %vm1472_vm2, %v1470_v1  ;;  %1306 = vmatprep.mubr.msk.bf16.mxu0 %vm1472_vm2, %v1470_v1  ;;  %v646_v6 = vshrl.u32 %v597_v0, 7  ;;  %v1253_v9 = vld [vmem:[%s1773_s4] ss:$0 sm:$0xff]  ;;  %v600_v12 = vld [vmem:[%s1770_s1 + $0x8] sm:$0xff]  ;;  %s1374_s25 = smul.u32 20, %s1787_s30 }
   0xe   : > { %v513_v5 = vsel %vm511_vm1, %v512_v4, 0  ;;  %1414 = vset.pattern.permute.xlu1 %v1473_v11  ;;  %1413 = vset.pattern.permute.xlu0 %v1473_v11  ;;  %v1416_v13 = vld [vmem:[%s1774_s5] sm:$0xff]   ;;  %s1233_s26 = sshll.u32 %s1787_s30, 1  ;;  %v601_v18 = vld [vmem:[%s1770_s1 + $0x10] sm:$0xff]  ;;  %vm500_vm7 = vcmask 220160   ;;  %v623_v24 = vld [vmem:[%s1771_s2 + $0x8] sm:$0xff] }
   0xf   : > { %v515_v8 = vand.u32 %v1415_v2, %v513_v5  ;;  %v647_v10 = vadd.s32 8, %v646_v6  ;;  %vm653_vm4 = vcmp.eq.s32.totalorder %v646_v6, %v1250_v7  ;;  %vm665_vm5 = vcmp.eq.s32.totalorder %v646_v6, %v1253_v9  ;;  %s1588_s15 = scalar_lea.vmem %s1783_s14, %s1233_s26  ;;  %s461_s30 = scalar_lea.vmem %s1769_s0, %s1374_s25  ;;  %606 = vperm.xlu1 %1414, %v600_v12   ;;  %v622_v22 = vld [vmem:[%s1771_s2] sm:$0xff]  ;;  %v624_v25 = vld [vmem:[%s1771_s2 + $0x10] sm:$0xff] }
  0x10   : > { %v1254_v14 = vsel %vm665_vm5, 1.0, %v1470_v1  ;;  %v1251_v15 = vsel %vm653_vm4, 1.0, %v1470_v1  ;;  %v1417_v19 = vld [vmem:[%s461_s30 + $0x8] sm:$0xff]   ;;  %v1418_v21 = vld [vmem:[%s461_s30] sm:$0xff]   ;;  %v1419_v23 = vld [vmem:[%s461_s30 + $0x10] ss:$0 sps:$4 sm:$0xff]  }
  0x11   : > { %1372 = vmatpush3.bf16.msra.mxu1 %v515_v8  ;;  %1303 = vmatpush3.bf16.msra.mxu0 %v515_v8  ;;  %vm654_vm6 = vcmp.eq.s32.totalorder %v647_v10, %v1250_v7  ;;  %v669_v16 = vsel %vm668_vm3, %v1254_v14, 0.0  ;;  %v599_v26 = vld [vmem:[%s1770_s1] sm:$0xff]  ;;  %v598_v28 = vand.u32 127, %v597_v0 }
  0x12   : > { %1371 = vmatprep.subr.bf16.mxu1 %v1470_v1  ;;  %1304 = vmatprep.subr.bf16.mxu0 %v1470_v1  ;;  %v1252_v17 = vsel %vm654_vm6, 1.0, %v1470_v1  ;;  %v1243_v47 = vld [vmem:[%s1776_s7] ss:$0 sm:$0xff] }
  0x13   : > { %670 = vadd.xlane.f32.xlu0 %v669_v16  ;;  %v1598_v20 = vpack.c.bf16 %v1252_v17, %v1251_v15  ;;  %609 = vperm.xlu1 %1414, %v601_v18   ;;  %v1242_v48 = vld [vmem:[%s1775_s6] ss:$0 sm:$0xff] }
  0x15   : > { %1373 = vmatpush3.bf16.msra.mxu1 %v1416_v13  ;;  %1305 = vmatpush3.bf16.msra.mxu0 %v1416_v13 }
  0x17   : > { %626 = vperm.xlu1 %1414, %v622_v22  }
  0x18   : > { %1311 = vmatmul.mubr.msk.bf16.vlgmr.msra.gmra.mxu1 %vm500_vm7, %v1417_v19  ;;  %1307 = vmatmul.mubr.msk.bf16.vlgmr.msra.gmra.mxu0 %vm500_vm7, %v1418_v21 }
  0x19   : > { %1314 = vmatprep.mubr.msk.bf16.mxu1 %vm1472_vm2, %v1470_v1 }
  0x1b   : > { %629 = vperm.xlu1 %1414, %v623_v24  }
  0x1f   : > { %632 = vperm.xlu1 %1414, %v624_v25  }
  0x20   : > { %1315 = vmatmul.mubr.msk.bf16.gmra.mxu1 %vm500_vm7, %v1419_v23 }
  0x29   : > { %603 = vperm.xlu0 %1413, %v599_v26  }
  0x8a   : > { %v607_v27 = vpop.permute.xlu1 %606 }
  0x8b   : > { %vm612_vm12 = vcmp.eq.s32.totalorder %v607_v27, %v598_v28 }
  0x8c   : > { %v1630_v40 = vsel %vm612_vm12, 1.0, %v1470_v1 }
  0x8e   : > { %v610_v29 = vpop.permute.xlu1 %609 }
  0x8f   : > { %vm613_vm8 = vcmp.eq.s32.totalorder %v610_v29, %v598_v28 }
  0x90   : > { %v1616_v30 = vsel %vm613_vm8, 1.0, %v1470_v1 }
  0x91   : > { %v621_v31 = vpack.c.bf16 %v1616_v30, %v1616_v30 }
  0x92   : > { %v627_v32 = vpop.permute.xlu1 %626 }
  0x93   : > { %vm634_vm9 = vcmp.eq.s32.totalorder %v627_v32, %v598_v28 }
  0x94   : > { %v1621_v33 = vsel %vm634_vm9, 1.0, %v1470_v1 }
  0x96   : > { %v630_v34 = vpop.permute.xlu1 %629 }
  0x97   : > { %vm635_vm10 = vcmp.eq.s32.totalorder %v630_v34, %v598_v28 }
  0x98   : > { %v1624_v35 = vsel %vm635_vm10, 1.0, %v1470_v1 }
  0x9a   : > { %v633_v38 = vpop.permute.xlu1 %632 }
  0x9b   : > { %vm636_vm11 = vcmp.eq.s32.totalorder %v633_v38, %v598_v28 }
  0x9c   : > { %v671_v36 = vpop.xlane.xlu0 %670  ;;  %v1627_v39 = vsel %vm636_vm11, 1.0, %v1470_v1 }
  0x9d   : > { %v672_v37 = vmax.f32 %v671_v36, 1.0 }
  0x9f   : > { %1420 = vrcp.f32 %v672_v37 }
  0xa4   : > { %v604_v41 = vpop.permute.xlu0 %603 }
  0xa5   : > { %vm611_vm13 = vcmp.eq.s32.totalorder %v604_v41, %v598_v28 }
  0xa6   : > { %v1633_v42 = vsel %vm611_vm13, 1.0, %v1470_v1 }
  0xa7   : > { %v620_v43 = vpack.c.bf16 %v1630_v40, %v1633_v42 }
  0xac   : > { %v1421_v44 = vpop.eup %1420 }
  0xad   : > { %v1637_v45 = vmul.f32 %v1421_v44, %v1254_v14 }
  0xaf   : > { %v676_v46 = vpack.c.bf16 %v1637_v45, %v1637_v45 }
  0xd8   : > { %v559_v49 = vpop.f32.mrf.mxu1  ;;  %v551_v50 = vpop.f32.mrf.mxu0 }
  0xd9   : > { %v1647_v51 = vadd.f32 %v1243_v47, %v559_v49  ;;  %v580_v52 = vadd.f32 %v1242_v48, %v551_v50 }
  0xda   : > { %v1312_v53 = vpop.f32.mrf.mxu1  ;;  %v1308_v54 = vpop.f32.mrf.mxu0 }
  0xdb   : > { %v594_v55 = vmax.f32 %v1647_v51, 0.0  ;;  %v582_v56 = vmax.f32 %v580_v52, 0.0  }
  0xdc   : > { %v562_v57 = vpop.f32.mrf.mxu1  ;;  %v554_v58 = vpop.f32.mrf.mxu0 }
  0xdd   : > { %v1650_v59 = vadd.f32 %v1243_v47, %v562_v57  ;;  %v581_v60 = vadd.f32 %v1242_v48, %v554_v58 }
  0xde   : > { %v1313_v61 = vpop.f32.mrf.mxu1  ;;  %v1309_v62 = vpop.f32.mrf.mxu0 }
  0xdf   : > { %v595_v63 = vmax.f32 %v1650_v59, 0.0  ;;  %v583_v0 = vmax.f32 %v581_v60, 0.0  }
  0xe0   : > { %v567_v2 = vpop.f32.mrf.mxu1 }
  0xe1   : > { %v1653_v3 = vadd.f32 %v1243_v47, %v567_v2 }
  0xe2   : > { %v1316_v4 = vpop.f32.mrf.mxu1 }
  0xe3   : > { %v596_v5 = vmax.f32 %v1653_v3, 0.0 }
  0xe4   : > { %v570_v6 = vpop.f32.mrf.mxu1 }
  0xe6   : > { %v1317_v7 = vpop.f32.mrf.mxu1 }
  0xe7 LB: >> { %vm686_vm14 = vcmask 130048   ;;  %v685_v8 = vpack.c.bf16 %v1460_v0, %v1464_v56  ;;  %vm744_vm15 = vcmask 261120   ;;  %v1474_v60 = vmov 0.0   ;;  %s1276_s19 = sshll.u32 %s1468_s18, 4  ;;  %s910_s25 = scalar_lea.vmem %s1778_s9, %s1468_s18  ;;  %s1468_s18 = sphi %s1660_s18, %s682_s18   ;;  %v1464_v56 = vphi %v582_v56, %v1785_v56   ;;  %v1460_v0 = vphi %v583_v0, %v1784_v0  }
  0xe8   : >> { %1320 = vmatprep.mubr.msk.bf16.mxu0 %vm686_vm14, %v620_v43  ;;  %1324 = vmatprep.subr.bf16.mxu1 %v1474_v60  ;;  %vm1475_vm0 = vmmov 0   ;;  %vm798_vm1 = vcmask 1043456   ;;  %vm794_vm3 = vcmask 195584   ;;  %s905_s22 = scalar_lea.vmem %s1777_s8, %s1276_s19  ;;  %s682_s18 = sadd.s32 1, %s1468_s18  }
  0xe9   : >> { %1318 = vmatprep.subr.bf16.mxu0 %v685_v8  ;;  %1328 = vmatprep.mubr.msk.bf16.mxu1 %vm1475_vm0, %v1474_v60  ;;  %p679_p4 = scmp.ge.s32.totalorder %s682_s18, 2  }
  0xea   : >> { %1319 = vmatpush3.bf16.msra.mxu0 %v685_v8  ;;  %v1436_v30 = vld [vmem:[%s1781_s12 + $0x8] sm:$0xff] (%p679_p4)   ;;  %v1437_v42 = vld [vmem:[%s1781_s12] sm:$0xff] (%p679_p4)  }
  0xeb   : >> { %1332 = vmatprep.subr.bf16.mxu0 %v1474_v60  ;;  %v1266_v43 = vld [vmem:[%s1780_s11] ss:$0 sm:$0xff] (%p679_p4) }
  0xed   : >> { %1321 = vmatmul.mubr.msk.bf16.vlgmr.msra.gmra.mxu0 %vm686_vm14, %v621_v31 }
  0xee   : >> { %1336 = vmatprep.mubr.msk.bf16.mxu0 %vm1475_vm0, %v1474_v60 }
 0x1ad   : >> { %v1322_v9 = vpop.f32.mrf.mxu0 }
 0x1ae   : >> { %v736_v10 = vadd.f32 %v1322_v9, %v596_v5 }
 0x1af   : >> { %v727_v11 = vpop.f32.mrf.mxu0 }
 0x1b0   : >> { %v743_v12 = vmax.f32 %v736_v10, 0.0  ;;  %v728_v13 = vadd.f32 %v727_v11, %v594_v55 }
 0x1b1   : >> { %v1323_v14 = vpop.f32.mrf.mxu0 }
 0x1b2   : >> { %v1685_v15 = vmax.f32 %v728_v13, 0.0  ;;  %v751_v16 = vsel %vm744_vm15, %v743_v12, -inf }
 0x1b3   : >> { %752 = vmax.xlane.f32.xlu1 %v751_v16  ;;  %v730_v17 = vpop.f32.mrf.mxu0 }
 0x1b4   : >> { %v731_v18 = vadd.f32 %v730_v17, %v595_v63  ;;  %v745_v19 = vsel %vm744_vm15, %v1685_v15, -inf }
 0x1b5   : >> { %746 = vmax.xlane.f32.xlu0 %v745_v19 }
 0x1b6   : >> { %v742_v21 = vmax.f32 %v731_v18, 0.0 }
 0x1b8   : >> { %v748_v22 = vsel %vm744_vm15, %v742_v21, -inf }
 0x1b9   : >> { %749 = vmax.xlane.f32.xlu0 %v748_v22 }
 0x23c   : >> { %v753_v24 = vpop.xlane.xlu1 %752 }
 0x23d   : >> { %v759_v27 = vmul.f32 %v1627_v39, %v753_v24 }
 0x23e   : >> { %v747_v23 = vpop.xlane.xlu0 %746 }
 0x23f   : >> { %v757_v25 = vmul.f32 %v1621_v33, %v747_v23  ;;  %v762_v36 = vsel %vm686_vm14, %v759_v27, -inf }
 0x241   : >> { %v760_v29 = vsel %vm686_vm14, %v757_v25, -inf }
 0x242   : >> { %v750_v26 = vpop.xlane.xlu0 %749 }
 0x243   : >> { %v758_v28 = vmul.f32 %v1624_v35, %v750_v26 }
 0x245   : >> { %v761_v32 = vsel %vm686_vm14, %v758_v28, -inf }
 0x246   : >> { %v763_v34 = vmax.f32 %v760_v29, %v761_v32 }
 0x248   : >> { %v764_v37 = vmax.f32 %v763_v34, %v762_v36 }
 0x24a   : >> { %v765_v38 = vrot.slane %v764_v37, 4 }
 0x24c   : >> { %v766_v41 = vmax.f32 %v764_v37, %v765_v38 }
 0x24e   : >> { %v767_v44 = vrot.slane %v766_v41, 2 }
 0x250   : >> { %v768_v47 = vmax.f32 %v766_v41, %v767_v44 }
 0x252   : >> { %v769_v48 = vrot.slane %v768_v47, 1 }
 0x254   : >> { %v770_v49 = vmax.f32 %v768_v47, %v769_v48 }
 0x256   : >> { %v773_v50 = vmul.f32 %v1627_v39, %v770_v49  ;;  %v771_v52 = vmul.f32 %v1621_v33, %v770_v49  ;;  %v772_v57 = vmul.f32 %v1624_v35, %v770_v49 }
 0x258   : >> { %v780_v53 = vsel %vm686_vm14, %v773_v50, -inf  ;;  %v774_v54 = vsel %vm686_vm14, %v771_v52, -inf  ;;  %v777_v58 = vsel %vm686_vm14, %v772_v57, -inf }
 0x259   : >> { %781 = vmax.xlane.f32.xlu1 %v780_v53  ;;  %775 = vmax.xlane.f32.xlu0 %v774_v54  ;;  %v1261_v54 = vld [vmem:[%s910_s25] ss:$0 sm:$0xff] }
 0x25d   : >> { %778 = vmax.xlane.f32.xlu1 %v777_v58 }
 0x2e2   : >> { %v782_v61 = vpop.xlane.xlu1 %781  ;;  %v776_v62 = vpop.xlane.xlu0 %775 }
 0x2e3   : >> { %v785_v2 = vsub.f32 %v743_v12, %v782_v61  ;;  %v783_v4 = vsub.f32 %v1685_v15, %v776_v62 }
 0x2e5   : >> { %v790_v6 = vmul.f32 1.442695, %v785_v2  ;;  %v786_v7 = vmul.f32 1.442695, %v783_v4 }
 0x2e6   : >> { %v779_v8 = vpop.xlane.xlu1 %778 }
 0x2e7   : >> { %1424 = vpow2.f32 %v790_v6  ;;  %v784_v9 = vsub.f32 %v742_v21, %v779_v8 }
 0x2e8   : >> { %1426 = vpow2.f32 %v786_v7 }
 0x2e9   : >> { %v788_v10 = vmul.f32 1.442695, %v784_v9 }
 0x2eb   : >> { %1428 = vpow2.f32 %v788_v10 }
 0x2f4   : >> { %v1425_v11 = vpop.eup %1424 }
 0x2f5   : >> { %v793_v13 = vpack.c.bf16 %v1425_v11, %v1425_v11  ;;  %v845_v14 = vmul.f32 %v1425_v11, %v743_v12  ;;  %v1427_v16 = vpop.eup %1426  ;;  %v1422_v12 = vld [vmem:[%s905_s22 + $0x8] sm:$0xff]  }
 0x2f6   : >> { %v843_v24 = vmul.f32 %v1427_v16, %v1685_v15  ;;  %v1423_v15 = vld [vmem:[%s905_s22] sm:$0xff]  }
 0x2f7   : >> { %v800_v17 = vsel %vm798_vm1, %v793_v13, 0  ;;  %v847_v18 = vpack.c.bf16 %v845_v14, %v845_v14 }
 0x2f8   : >> { %v1429_v19 = vpop.eup %1428  ;;  %1325 = vmatpush3.bf16.msra.mxu1 %v800_v17 }
 0x2f9   : >> { %v849_v22 = vsel %vm798_vm1, %v847_v18, 0  ;;  %1326 = vmatprep.subr.bf16.mxu1 %v1474_v60  ;;  %v792_v23 = vpack.c.bf16 %v1429_v19, %v1427_v16  ;;  %v844_v25 = vmul.f32 %v1429_v19, %v742_v21 }
 0x2fa   : >> { %1333 = vmatpush3.bf16.msra.mxu0 %v849_v22 }
 0x2fb   : >> { %1334 = vmatprep.subr.bf16.mxu0 %v1474_v60  ;;  %v846_v26 = vpack.c.bf16 %v844_v25, %v843_v24 }
 0x2fc   : >> { %1327 = vmatpush3.bf16.msra.mxu1 %v792_v23 }
 0x2fd   : >> { %1340 = vmatprep.subr.bf16.mxu1 %v1474_v60 }
 0x2fe   : >> { %1335 = vmatpush3.bf16.msra.mxu0 %v846_v26 }
 0x2ff   : >> { %1329 = vmatmul.mubr.msk.bf16.vlgmr.msra.gmra.mxu1 %vm794_vm3, %v1598_v20  ;;  %1348 = vmatprep.subr.bf16.mxu0 (%p679_p4), %v1470_v1 }
 0x300   : >> { %1344 = vmatprep.mubr.msk.bf16.mxu1 %vm1475_vm0, %v1474_v60  ;;  %1341 = vmatpush3.bf16.msra.mxu1 %v1422_v12 }
 0x301   : >> { %1337 = vmatmul.mubr.msk.bf16.vlgmr.msra.gmra.mxu0 %vm794_vm3, %v1598_v20  ;;  %1342 = vmatprep.subr.bf16.mxu1 %v1474_v60  ;;  %v1435_v20 = vld [vmem:[%s1779_s10] sm:$0xff] (%p679_p4)  }
 0x302   : > { %1350 = vmatprep.mubr.msk.bf16.mxu0 (%p679_p4), %vm1472_vm2, %v1470_v1 }
 0x304   : >> { %1343 = vmatpush3.bf16.msra.mxu1 %v1423_v15 }
 0x305   : > { %1354 = vmatprep.subr.bf16.mxu1 (%p679_p4), %v1470_v1 }
 0x3bf   : >> { %v836_v21 = vpop.f32.mrf.mxu1 }
 0x3c0   : >> { %v892_v27 = vadd.f32 1e-09, %v836_v21  ;;  %vm896_vm4 = vcmp.gt.f32.partialorder %v836_v21, 0.0 }
 0x3c1   : >> { %v1330_v28 = vpop.f32.mrf.mxu1  ;;  %v885_v29 = vpop.f32.mrf.mxu0 }
 0x3c2   : >> { %1430 = vrcp.f32 %v892_v27 }
 0x3c3   : >> { %v839_v32 = vpop.f32.mrf.mxu1  ;;  %v1338_v34 = vpop.f32.mrf.mxu0 }
 0x3c4   : >> { %v893_v36 = vadd.f32 1e-09, %v839_v32  ;;  %vm897_vm5 = vcmp.gt.f32.partialorder %v839_v32, 0.0 }
 0x3c5   : >> { %v1331_v37 = vpop.f32.mrf.mxu1  ;;  %v888_v38 = vpop.f32.mrf.mxu0 }
 0x3c6   : >> { %1432 = vrcp.f32 %v893_v36 }
 0x3c7   : >> { %v1339_v41 = vpop.f32.mrf.mxu0 }
 0x3cf   : >> { %v1431_v44 = vpop.eup %1430 }
 0x3d0   : >> { %v898_v47 = vmul.f32 %v1431_v44, %v885_v29 }
 0x3d2   : >> { %v900_v50 = vsel %vm896_vm4, %v898_v47, 0.0 }
 0x3d3   : >> { %v1433_v48 = vpop.eup %1432 }
 0x3d4   : >> { %v899_v49 = vmul.f32 %v1433_v48, %v888_v38 }
 0x3d6   : >> { %v901_v52 = vsel %vm897_vm5, %v899_v49, 0.0 }
 0x3d7   : >> { %v902_v53 = vpack.c.bf16 %v901_v52, %v900_v50 }
 0x3d9   : >> { %1345 = vmatmul.mubr.msk.bf16.vlgmr.msra.gmra.mxu1 %vm744_vm15, %v902_v53 }
 0x3da   : > { %1358 = vmatprep.mubr.msk.bf16.mxu1 (%p679_p4), %vm1472_vm2, %v1470_v1 }
 0x499   : >> { %v967_v57 = vpop.f32.mrf.mxu1 }
 0x49a   : >> { %v968_v58 = vadd.f32 %v1261_v54, %v967_v57 }
 0x49b   : >> { %v1346_v60 = vpop.f32.mrf.mxu1 }
 0x49c   : >> { %v974_v61 = vmax.f32 %v968_v58, 0.0 }
 0x49d   : >> { %v970_v62 = vpop.f32.mrf.mxu1 }
 0x49e   : >> { %v976_v2 = vadd.f32 %v1464_v56, %v974_v61   ;;  %v971_v4 = vadd.f32 %v1261_v54, %v970_v62 }
 0x49f   : >> { %v1347_v6 = vpop.f32.mrf.mxu1 }
 0x4a0   : >> { %v975_v7 = vmax.f32 %v971_v4, 0.0  ;;  %v1785_v56 = vmov %v976_v2  ;;  %681 = sbr.rel (!%p679_p4) target bundleno = 231 (0xe7), region = 115 }
 0x4a1   : > { %v1434_v56 = vld [vmem:[%s1779_s10 + $0x8] sm:$0xff] (%p679_p4)  }
 0x4a2   : >> { %v977_v8 = vadd.f32 %v1460_v0, %v975_v7   ;;  %1355 = vmatpush3.bf16.msra.mxu1 (%p679_p4), %v1434_v56 }
 0x4a3   : > { %1356 = vmatprep.subr.bf16.mxu1 (%p679_p4), %v1470_v1 }
 0x4a4   : >> { %v1784_v0 = vmov %v977_v8  ;;  %v978_v9 = vpack.c.bf16 (%p679_p4), %v977_v8, %v976_v2 }
 0x4a5   : > { %v1270_v0 = vld [vmem:[%s1782_s13] ss:$0 sm:$0xff] }
 0x4a6   : > { %1349 = vmatpush3.bf16.msra.mxu0 %v978_v9  ;;  %1357 = vmatpush3.bf16.msra.mxu1 %v1435_v20 }
 0x4a7   : > { %1362 = vmatprep.subr.bf16.mxu0 %v1470_v1 }
 0x4a9   : > { %1351 = vmatmul.mubr.msk.bf16.vlgmr.msra.gmra.mxu0 %vm686_vm14, %v676_v46 }
 0x4aa   : > { %1366 = vmatprep.mubr.msk.bf16.mxu0 %vm1472_vm2, %v1470_v1  ;;  %1363 = vmatpush3.bf16.msra.mxu0 %v1436_v30 }
 0x4ab   : > { %1364 = vmatprep.subr.bf16.mxu0 %v1470_v1 }
 0x4ae   : > { %1365 = vmatpush3.bf16.msra.mxu0 %v1437_v42 }
 0x569   : > { %v1017_v31 = vpop.f32.mrf.mxu0 }
 0x56a   : > { %v1023_v33 = vpack.c.bf16 %v1017_v31, %v1017_v31 }
 0x56b   : > { %v1352_v35 = vpop.f32.mrf.mxu0 }
 0x56c   : > { %1359 = vmatmul.mubr.msk.bf16.vlgmr.msra.gmra.mxu1 %vm744_vm15, %v1023_v33 }
 0x56d   : > { %v1020_v39 = vpop.f32.mrf.mxu0 }
 0x56f   : > { %v1353_v40 = vpop.f32.mrf.mxu0 }
 0x62c   : > { %v1085_v45 = vpop.f32.mrf.mxu1 }
 0x62d   : > { %v1086_v46 = vadd.f32 %v1266_v43, %v1085_v45 }
 0x62e   : > { %v1360_v1 = vpop.f32.mrf.mxu1 }
 0x62f   : > { %v1091_v51 = vmax.f32 %v1086_v46, 0.0 }
 0x630   : > { %v1088_v55 = vpop.f32.mrf.mxu1 }
 0x631   : > { %v1092_v59 = vpack.c.bf16 %v1091_v51, %v1091_v51 }
 0x632   : > { %v1361_v63 = vpop.f32.mrf.mxu1 }
 0x633   : > { %1367 = vmatmul.mubr.msk.bf16.vlgmr.msra.gmra.mxu0 %vm744_vm15, %v1092_v59 }
 0x6f3   : > { %v1153_v3 = vpop.f32.mrf.mxu0 }
 0x6f4   : > { %v1154_v5 = vadd.f32 %v1270_v0, %v1153_v3 }
 0x6f5   : > { %v1368_v10 = vpop.f32.mrf.mxu0 }
 0x6f6   : > { %1159 = vst [vmem:[%s1588_s15] sm:$0x3] %v1154_v5 }
 0x6f7   : > { %v1156_v11 = vpop.f32.mrf.mxu0 }
 0x6f9   : > { %v1369_v13 = vpop.f32.mrf.mxu0 }
 0x6fa PF: > { %s24_s29 = sadd.s32 1, %s1456_s29  }
 0x6fb   : > { %p21_p5 = scmp.ge.s32.totalorder %s24_s29, 4  }
 0x6fd   :  { %23 = sbr.rel (!%p21_p5) target bundleno = 1 (0x1), region = 126 }

</bundles_post_ra>
